<compile_context>
chip_gen: v7x
topology: tpu7x:2x2x1
jax: 0.10.0
libtpu: 0.0.40
codegen_flags: <defaults>
</compile_context>

<pallas_src>
import jax
import jax.numpy as jnp
from jax.experimental import pallas as pl
from jax.experimental.pallas import tpu as pltpu

LN_EPS = 1e-5  # PyTorch nn.LayerNorm default


def _round_up(x, m):
    return ((x + m - 1) // m) * m


def _encoder_embedding_kernel(seq_sm,                 # (B, S_pad) int32, SMEM (scalar prefetch)
                              segl_ref,               # (1, TB, 1) int32 segment-id tile
                              tok_hbm,                # (V, D) token table, HBM (pl.ANY)
                              pos_ref,                # (TB, D) position rows
                              segtab_ref,             # (nseg, D) segment table (VMEM resident)
                              gamma_ref, beta_ref,    # (1, D) LayerNorm params
                              out_ref,                # (1, TB, D) f32 output tile
                              gbuf,                   # (TB, D) VMEM gather scratch (table dtype)
                              sem):                   # DMA semaphore
    TB, D = gbuf.shape
    nseg = segtab_ref.shape[0]
    b = pl.program_id(0)
    st = pl.program_id(1)
    base = st * TB

    # ---- Token gather: per-row DMA from the HBM table into VMEM scratch. ----
    @pl.loop(0, TB)
    def _issue(t):
        tok_id = seq_sm[b, base + t]
        pltpu.make_async_copy(tok_hbm.at[pl.ds(tok_id, 1), :],
                              gbuf.at[pl.ds(t, 1), :],
                              sem).start()

    # ---- Segment embedding (tiny table) on the VPU while the gather DMAs fly. ----
    seg_ids = segl_ref[0]                                       # (TB, 1) int32
    seg0 = segtab_ref[0:1, :].astype(jnp.float32)                # (1, D)
    if nseg == 2:
        seg1 = segtab_ref[1:2, :].astype(jnp.float32)
        seg = jnp.where(seg_ids == 0, seg0, seg1)                # (TB, D)
    else:
        seg = jnp.where(seg_ids == 0, seg0, 0.0)
        for k in range(1, nseg):
            seg = seg + jnp.where(seg_ids == k,
                                  segtab_ref[k:k + 1, :].astype(jnp.float32), 0.0)

    # ---- Wait for all row gathers (same-sized descriptor per issued copy). ----
    @pl.loop(0, TB)
    def _drain(t):
        pltpu.make_async_copy(tok_hbm.at[pl.ds(0, 1), :],
                              gbuf.at[pl.ds(t, 1), :],
                              sem).wait()

    x = gbuf[...].astype(jnp.float32) + seg + pos_ref[...].astype(jnp.float32)

    # ---- Single-pass LayerNorm (var clamped against cancellation). ----
    inv_d = jnp.float32(1.0 / D)
    mean = jnp.sum(x, axis=-1, keepdims=True) * inv_d
    var = jnp.maximum(jnp.sum(x * x, axis=-1, keepdims=True) * inv_d - mean * mean, 0.0)
    inv_std = jax.lax.rsqrt(var + jnp.float32(LN_EPS))           # EUP

    out_ref[0] = ((x - mean) * (inv_std * gamma_ref[...].astype(jnp.float32))
                  + beta_ref[...].astype(jnp.float32))


def encoder_embedding(sequence, segment_label,
                      tok_table, pos_table, seg_table,
                      gamma, beta, *, token_block=512):
    """(B, S) int32 ids -> (B, S, D) float32 LayerNorm'd embeddings (eval mode)."""
    B, S = sequence.shape
    V, D = tok_table.shape
    nseg = seg_table.shape[0]

    gamma2 = jnp.asarray(gamma, jnp.float32).reshape(1, D)
    beta2 = jnp.asarray(beta, jnp.float32).reshape(1, D)

    # Token tile size: multiple of 8 dividing round_up(S, 8)  (so S_pad is minimal and
    # there is no pad/slice at all when S is already 8-aligned and <= token_block).
    S8 = _round_up(S, 8)
    tb_cap = max(8, (min(token_block, S8) // 8) * 8)
    TB = 8
    for cand in range(tb_cap, 7, -8):
        if S8 % cand == 0:
            TB = cand
            break
    S_pad = S8
    n_st = S_pad // TB
    pad = S_pad - S

    seq_i = sequence.astype(jnp.int32)
    segl_i = segment_label.astype(jnp.int32)
    if pad:
        seq_i = jnp.pad(seq_i, ((0, 0), (0, pad)))       # padded ids -> row 0 (valid)
        segl_i = jnp.pad(segl_i, ((0, 0), (0, pad)))
    segl_col = segl_i[..., None]                          # (B, S_pad, 1)

    # Position rows: exactly S_pad rows so BlockSpec slices are always in range.
    max_pos = pos_table.shape[0]
    if max_pos >= S_pad:
        pos_used = pos_table[:S_pad]
    else:
        pos_used = jnp.pad(pos_table, ((0, S_pad - max_pos), (0, 0)))

    # VMEM budget: small resident tables + double-buffered pos/out tiles + gather scratch.
    tok_isz = jnp.dtype(tok_table.dtype).itemsize
    pos_isz = jnp.dtype(pos_used.dtype).itemsize
    work_bytes = (2 * TB * D * 4                       # output tile, double-buffered
                  + 2 * TB * D * pos_isz               # position tile, double-buffered
                  + TB * D * tok_isz                   # gather scratch
                  + 2 * 4 * (nseg * D + 2 * D)         # seg table + gamma + beta (x2 bufs)
                  + 2 * 4 * TB)                        # segment-id tile
    vmem_limit = int(min(max(16 * 1024 * 1024, work_bytes + (2 << 20)),
                         64 * 1024 * 1024))            # stay under v7x's 64 MiB/TC

    grid_spec = pltpu.PrefetchScalarGridSpec(
        num_scalar_prefetch=1,                         # token ids -> SMEM (DMA addressing)
        grid=(B, n_st),
        in_specs=[
            pl.BlockSpec((1, TB, 1), lambda b, st, seq: (b, st, 0)),   # segment ids
            pl.BlockSpec(memory_space=pl.ANY),                          # token table in HBM
            pl.BlockSpec((TB, D), lambda b, st, seq: (st, 0)),          # position rows
            pl.BlockSpec((nseg, D), lambda b, st, seq: (0, 0)),         # segment table
            pl.BlockSpec((1, D), lambda b, st, seq: (0, 0)),            # gamma
            pl.BlockSpec((1, D), lambda b, st, seq: (0, 0)),            # beta
        ],
        out_specs=pl.BlockSpec((1, TB, D), lambda b, st, seq: (b, st, 0)),
        scratch_shapes=[pltpu.VMEM((TB, D), tok_table.dtype),
                        pltpu.SemaphoreType.DMA(())],
    )

    out = pl.pallas_call(
        _encoder_embedding_kernel,
        out_shape=jax.ShapeDtypeStruct((B, S_pad, D), jnp.float32),
        grid_spec=grid_spec,
        compiler_params=pltpu.CompilerParams(
            dimension_semantics=("parallel", "parallel"),
            vmem_limit_bytes=vmem_limit,
        ),
    )(seq_i, segl_col, tok_table, pos_used, seg_table, gamma2, beta2)

    if pad:
        out = out[:, :S, :]
    return out


def reference_forward(sequence, segment_label, tok_table, pos_table, seg_table, gamma, beta):
    B, S = sequence.shape
    x = (tok_table[sequence]
         + pos_table[:S][None, :, :]
         + seg_table[segment_label])
    mean = jnp.mean(x, axis=-1, keepdims=True)
    var = jnp.mean((x - mean) ** 2, axis=-1, keepdims=True)
    xhat = (x - mean) * jax.lax.rsqrt(var + LN_EPS)
    return xhat * gamma.reshape(1, 1, -1) + beta.reshape(1, 1, -1)


if __name__ == "__main__":
    VOCAB = 96
    D = 128            # embedding_dim
    PAD_ID = 0
    MAX_SEQ = 64       # max_seq_len
    N_SEG = 2
    B, S = 2, 16

    key = jax.random.PRNGKey(0)
    k_tok, k_pos, k_seg, k_g, k_b, k_ids, k_segl = jax.random.split(key, 7)

    # nn.Embedding weights ~ N(0, 1); padding_idx row zeroed.
    tok_table = jax.random.normal(k_tok, (VOCAB, D), jnp.float32).at[PAD_ID].set(0.0)
    pos_table = jax.random.normal(k_pos, (MAX_SEQ, D), jnp.float32)
    seg_table = jax.random.normal(k_seg, (N_SEG, D), jnp.float32)

    # PyTorch-style (D,) LayerNorm params (wrapper reshapes to (1, D)).
    gamma = 1.0 + 0.1 * jax.random.normal(k_g, (D,), jnp.float32)
    beta = 0.1 * jax.random.normal(k_b, (D,), jnp.float32)

    sequence = jax.random.randint(k_ids, (B, S), 0, VOCAB, dtype=jnp.int32)
    segment_label = jax.random.randint(k_segl, (B, S), 0, N_SEG, dtype=jnp.int32)

    out = jax.block_until_ready(
        encoder_embedding(sequence, segment_label,
                          tok_table, pos_table, seg_table, gamma, beta))
    ref = reference_forward(sequence, segment_label,
                            tok_table, pos_table, seg_table, gamma, beta)
    assert out.shape == (B, S, D)
    err = float(jnp.max(jnp.abs(out - ref)))
    assert err < 1e-3, f"max abs err {err}"

    # Second shape: S not a multiple of 8 exercises the padding/slicing path.
    S2 = 12
    seq2 = jax.random.randint(jax.random.PRNGKey(1), (B, S2), 0, VOCAB, dtype=jnp.int32)
    segl2 = jax.random.randint(jax.random.PRNGKey(2), (B, S2), 0, N_SEG, dtype=jnp.int32)
    out2 = jax.block_until_ready(
        encoder_embedding(seq2, segl2, tok_table, pos_table, seg_table, gamma, beta))
    ref2 = reference_forward(seq2, segl2, tok_table, pos_table, seg_table, gamma, beta)
    assert out2.shape == (B, S2, D)
    err2 = float(jnp.max(jnp.abs(out2 - ref2)))
    assert err2 < 1e-3, f"max abs err (padded) {err2}"

    # Third shape: multi-tile grid (n_st > 1) exercises the SMEM base-offset gather path.
    S3 = 24
    seq3 = jax.random.randint(jax.random.PRNGKey(3), (B, S3), 0, VOCAB, dtype=jnp.int32)
    segl3 = jax.random.randint(jax.random.PRNGKey(4), (B, S3), 0, N_SEG, dtype=jnp.int32)
    out3 = jax.block_until_ready(
        encoder_embedding(seq3, segl3, tok_table, pos_table, seg_table, gamma, beta,
                          token_block=8))
    ref3 = reference_forward(seq3, segl3, tok_table, pos_table, seg_table, gamma, beta)
    assert out3.shape == (B, S3, D)
    err3 = float(jnp.max(jnp.abs(out3 - ref3)))
    assert err3 < 1e-3, f"max abs err (multi-tile) {err3}"

    print("KERNEL_OK")
</pallas_src>

<mosaic_0001>
module attributes {stable_mosaic.version = 11 : i64} {
  func.func @_encoder_embedding_kernel(%arg0: i32, %arg1: i32, %arg2: memref<2x16xi32, #tpu.memory_space<smem>>, %arg3: memref<1x16x1xi32, #tpu.memory_space<vmem>>, %arg4: memref<96x128xf32, #tpu.memory_space<any>>, %arg5: memref<16x128xf32, #tpu.memory_space<vmem>>, %arg6: memref<2x128xf32, #tpu.memory_space<vmem>>, %arg7: memref<1x128xf32, #tpu.memory_space<vmem>>, %arg8: memref<1x128xf32, #tpu.memory_space<vmem>>, %arg9: memref<1x16x128xf32, #tpu.memory_space<vmem>>, %arg10: memref<16x128xf32, #tpu.memory_space<vmem>>, %arg11: memref<!tpu.dma_semaphore, #tpu.memory_space<semaphore_mem>>) attributes {dimension_semantics = [#tpu.dimension_semantics<parallel>, #tpu.dimension_semantics<parallel>], iteration_bounds = array<i64: 2, 1>, scalar_prefetch = 1 : i64, scratch_operands = 2 : i64, tpu.core_type = #tpu.core_type<tc>, window_params = [{transform_indices = @transform_0, window_bounds = array<i64: 1, 16, 1>}, {}, {transform_indices = @transform_2, window_bounds = array<i64: 16, 128>}, {pipeline_mode = #tpu.pipeline_mode<synchronous>, transform_indices = @transform_3, window_bounds = array<i64: 2, 128>}, {pipeline_mode = #tpu.pipeline_mode<synchronous>, transform_indices = @transform_4, window_bounds = array<i64: 1, 128>}, {pipeline_mode = #tpu.pipeline_mode<synchronous>, transform_indices = @transform_5, window_bounds = array<i64: 1, 128>}, {transform_indices = @transform_6, window_bounds = array<i64: 1, 16, 128>}]} {
    %c16_i32 = arith.constant 16 : i32
    %0 = arith.muli %arg1, %c16_i32 : i32
    %c0_i32 = arith.constant 0 : i32
    %c16_i32_0 = arith.constant 16 : i32
    %1 = arith.addi %c0_i32, %c16_i32_0 : i32
    %c1_i32 = arith.constant 1 : i32
    scf.for %arg12 = %c0_i32 to %1 step %c1_i32  : i32 {
      %c1_i32_28 = arith.constant 1 : i32
      %49 = arith.muli %arg12, %c1_i32_28 : i32
      %c0_i32_29 = arith.constant 0 : i32
      %50 = arith.addi %c0_i32_29, %49 : i32
      %51 = arith.addi %0, %50 : i32
      %52 = arith.index_cast %arg0 : i32 to index
      %53 = arith.index_cast %51 : i32 to index
      %54 = memref.load %arg2[%52, %53] : memref<2x16xi32, #tpu.memory_space<smem>>
      %c0_i32_30 = arith.constant 0 : i32
      %55 = tpu.memref_slice %arg4[%54, %c0_i32_30] : memref<96x128xf32, #tpu.memory_space<any>> -> memref<1x128xf32, #tpu.memory_space<any>>
      %c0_i32_31 = arith.constant 0 : i32
      %56 = tpu.memref_slice %arg10[%50, %c0_i32_31] : memref<16x128xf32, #tpu.memory_space<vmem>> -> memref<1x128xf32, #tpu.memory_space<vmem>>
      tpu.enqueue_dma source(%55 : memref<1x128xf32, #tpu.memory_space<any>>) target(%56 : memref<1x128xf32, #tpu.memory_space<vmem>>) target_semaphore(%arg11 : memref<!tpu.dma_semaphore, #tpu.memory_space<semaphore_mem>>)
    }
    %c16_i32_1 = arith.constant 16 : i32
    %c0 = arith.constant 0 : index
    %c0_2 = arith.constant 0 : index
    %c0_3 = arith.constant 0 : index
    %2 = vector.load %arg3[%c0, %c0_2, %c0_3] : memref<1x16x1xi32, #tpu.memory_space<vmem>>, vector<1x16x1xi32>
    %3 = vector.shape_cast %2 : vector<1x16x1xi32> to vector<16x1xi32>
    %c0_4 = arith.constant 0 : index
    %c0_5 = arith.constant 0 : index
    %4 = vector.load %arg6[%c0_4, %c0_5] : memref<2x128xf32, #tpu.memory_space<vmem>>, vector<1x128xf32>
    %c1 = arith.constant 1 : index
    %c0_6 = arith.constant 0 : index
    %5 = vector.load %arg6[%c1, %c0_6] : memref<2x128xf32, #tpu.memory_space<vmem>>, vector<1x128xf32>
    %c0_i32_7 = arith.constant 0 : i32
    %6 = vector.broadcast %c0_i32_7 : i32 to vector<16x1xi32>
    %7 = arith.cmpi eq, %3, %6 : vector<16x1xi32>
    %8 = vector.shape_cast %7 : vector<16x1xi1> to vector<16x1xi1>
    %9 = vector.broadcast %8 : vector<16x1xi1> to vector<16x128xi1>
    %10 = vector.shape_cast %4 : vector<1x128xf32> to vector<1x128xf32>
    %11 = vector.broadcast %10 : vector<1x128xf32> to vector<16x128xf32>
    %12 = vector.shape_cast %5 : vector<1x128xf32> to vector<1x128xf32>
    %13 = vector.broadcast %12 : vector<1x128xf32> to vector<16x128xf32>
    %14 = arith.select %9, %11, %13 : vector<16x128xi1>, vector<16x128xf32>
    %c0_i32_8 = arith.constant 0 : i32
    %c16_i32_9 = arith.constant 16 : i32
    %15 = arith.addi %c0_i32_8, %c16_i32_9 : i32
    %c1_i32_10 = arith.constant 1 : i32
    scf.for %arg12 = %c0_i32_8 to %15 step %c1_i32_10  : i32 {
      %c1_i32_28 = arith.constant 1 : i32
      %49 = arith.muli %arg12, %c1_i32_28 : i32
      %c0_i32_29 = arith.constant 0 : i32
      %50 = arith.addi %c0_i32_29, %49 : i32
      %c0_i32_30 = arith.constant 0 : i32
      %c0_i32_31 = arith.constant 0 : i32
      %51 = tpu.memref_slice %arg4[%c0_i32_30, %c0_i32_31] : memref<96x128xf32, #tpu.memory_space<any>> -> memref<1x128xf32, #tpu.memory_space<any>>
      %c0_i32_32 = arith.constant 0 : i32
      %52 = tpu.memref_slice %arg10[%50, %c0_i32_32] : memref<16x128xf32, #tpu.memory_space<vmem>> -> memref<1x128xf32, #tpu.memory_space<vmem>>
      tpu.wait_dma2 semaphore(%arg11 : memref<!tpu.dma_semaphore, #tpu.memory_space<semaphore_mem>>) src(%51 : memref<1x128xf32, #tpu.memory_space<any>>) dst(%52 : memref<1x128xf32, #tpu.memory_space<vmem>>)
    }
    %c16_i32_11 = arith.constant 16 : i32
    %c0_12 = arith.constant 0 : index
    %c0_13 = arith.constant 0 : index
    %16 = vector.load %arg10[%c0_12, %c0_13] : memref<16x128xf32, #tpu.memory_space<vmem>>, vector<16x128xf32>
    %17 = arith.addf %16, %14 : vector<16x128xf32>
    %c0_14 = arith.constant 0 : index
    %c0_15 = arith.constant 0 : index
    %18 = vector.load %arg5[%c0_14, %c0_15] : memref<16x128xf32, #tpu.memory_space<vmem>>, vector<16x128xf32>
    %19 = arith.addf %17, %18 : vector<16x128xf32>
    %cst = arith.constant dense<0.000000e+00> : vector<16xf32>
    %20 = vector.multi_reduction <add>, %19, %cst [1] : vector<16x128xf32> to vector<16xf32>
    %21 = vector.shape_cast %20 : vector<16xf32> to vector<16x1xf32>
    %cst_16 = arith.constant 7.812500e-03 : f32
    %22 = vector.broadcast %cst_16 : f32 to vector<16x1xf32>
    %23 = arith.mulf %21, %22 : vector<16x1xf32>
    %24 = arith.mulf %19, %19 : vector<16x128xf32>
    %cst_17 = arith.constant dense<0.000000e+00> : vector<16xf32>
    %25 = vector.multi_reduction <add>, %24, %cst_17 [1] : vector<16x128xf32> to vector<16xf32>
    %26 = vector.shape_cast %25 : vector<16xf32> to vector<16x1xf32>
    %cst_18 = arith.constant 7.812500e-03 : f32
    %27 = vector.broadcast %cst_18 : f32 to vector<16x1xf32>
    %28 = arith.mulf %26, %27 : vector<16x1xf32>
    %29 = arith.mulf %23, %23 : vector<16x1xf32>
    %30 = arith.subf %28, %29 : vector<16x1xf32>
    %cst_19 = arith.constant 0.000000e+00 : f32
    %31 = vector.broadcast %cst_19 : f32 to vector<16x1xf32>
    %32 = arith.maximumf %30, %31 : vector<16x1xf32>
    %cst_20 = arith.constant 9.99999974E-6 : f32
    %33 = vector.broadcast %cst_20 : f32 to vector<16x1xf32>
    %34 = arith.addf %32, %33 : vector<16x1xf32>
    %35 = math.rsqrt %34 : vector<16x1xf32>
    %36 = vector.broadcast %23 : vector<16x1xf32> to vector<16x128xf32>
    %37 = arith.subf %19, %36 : vector<16x128xf32>
    %c0_21 = arith.constant 0 : index
    %c0_22 = arith.constant 0 : index
    %38 = vector.load %arg7[%c0_21, %c0_22] : memref<1x128xf32, #tpu.memory_space<vmem>>, vector<1x128xf32>
    %39 = vector.broadcast %35 : vector<16x1xf32> to vector<16x128xf32>
    %40 = vector.broadcast %38 : vector<1x128xf32> to vector<16x128xf32>
    %41 = arith.mulf %39, %40 : vector<16x128xf32>
    %42 = arith.mulf %37, %41 : vector<16x128xf32>
    %c0_23 = arith.constant 0 : index
    %c0_24 = arith.constant 0 : index
    %43 = vector.load %arg8[%c0_23, %c0_24] : memref<1x128xf32, #tpu.memory_space<vmem>>, vector<1x128xf32>
    %44 = vector.broadcast %43 : vector<1x128xf32> to vector<16x128xf32>
    %45 = arith.addf %42, %44 : vector<16x128xf32>
    %c0_25 = arith.constant 0 : index
    %c0_26 = arith.constant 0 : index
    %c0_27 = arith.constant 0 : index
    %46 = vector.load %arg9[%c0_25, %c0_26, %c0_27] : memref<1x16x128xf32, #tpu.memory_space<vmem>>, vector<1x16x128xf32>
    %47 = vector.shape_cast %46 : vector<1x16x128xf32> to vector<16x128xf32>
    %48 = vector.shape_cast %45 : vector<16x128xf32> to vector<1x16x128xf32>
    tpu.vector_store %arg9[%c0_25, %c0_26, %c0_27], %48 {strides = array<i32>} : memref<1x16x128xf32, #tpu.memory_space<vmem>>, vector<1x16x128xf32>,
    return
  }
  func.func @transform_0(%arg0: i32, %arg1: i32, %arg2: memref<2x16xi32, #tpu.memory_space<smem>>) -> (i32, i32, i32) {
    %c0_i32 = arith.constant 0 : i32
    %c0_i32_0 = arith.constant 0 : i32
    return %arg0, %arg1, %c0_i32 : i32, i32, i32
  }
  func.func @transform_2(%arg0: i32, %arg1: i32, %arg2: memref<2x16xi32, #tpu.memory_space<smem>>) -> (i32, i32) {
    %c0_i32 = arith.constant 0 : i32
    %c0_i32_0 = arith.constant 0 : i32
    return %arg1, %c0_i32 : i32, i32
  }
  func.func @transform_3(%arg0: i32, %arg1: i32, %arg2: memref<2x16xi32, #tpu.memory_space<smem>>) -> (i32, i32) {
    %c0_i32 = arith.constant 0 : i32
    %c0_i32_0 = arith.constant 0 : i32
    %c0_i32_1 = arith.constant 0 : i32
    return %c0_i32, %c0_i32_0 : i32, i32
  }
  func.func @transform_4(%arg0: i32, %arg1: i32, %arg2: memref<2x16xi32, #tpu.memory_space<smem>>) -> (i32, i32) {
    %c0_i32 = arith.constant 0 : i32
    %c0_i32_0 = arith.constant 0 : i32
    %c0_i32_1 = arith.constant 0 : i32
    return %c0_i32, %c0_i32_0 : i32, i32
  }
  func.func @transform_5(%arg0: i32, %arg1: i32, %arg2: memref<2x16xi32, #tpu.memory_space<smem>>) -> (i32, i32) {
    %c0_i32 = arith.constant 0 : i32
    %c0_i32_0 = arith.constant 0 : i32
    %c0_i32_1 = arith.constant 0 : i32
    return %c0_i32, %c0_i32_0 : i32, i32
  }
  func.func @transform_6(%arg0: i32, %arg1: i32, %arg2: memref<2x16xi32, #tpu.memory_space<smem>>) -> (i32, i32, i32) {
    %c0_i32 = arith.constant 0 : i32
    %c0_i32_0 = arith.constant 0 : i32
    return %arg0, %arg1, %c0_i32 : i32, i32, i32
  }
}

</mosaic_0001>

<bundles_post_ra>
// kernel: tpu_custom_call.1
= control target key start
LH: loop header
LB: loop body
LE: loop exit
PB: predicated region body
PF: predicated region fallthrough
CT: control target
= control target key end

     0   :  { %s989_s0 = inlined_call_operand.vmem [shape: s32[2,16], index: 0, kind: input, shape index: {}]   ;;  %s990_s1 = inlined_call_operand.vmem [shape: s32[2,16,1], index: 1, kind: input, shape index: {}]   ;;  %s991_s2 = inlined_call_operand.hbm [shape: f32[96,128], index: 2, kind: input, shape index: {}]   ;;  %s992_s3 = inlined_call_operand.vmem [shape: f32[16,128], index: 3, kind: input, shape index: {}]   ;;  %s993_s4 = inlined_call_operand.vmem [shape: f32[2,128], index: 4, kind: input, shape index: {}]   ;;  %s994_s5 = inlined_call_operand.vmem [shape: f32[1,128], index: 5, kind: input, shape index: {}]   ;;  %s995_s6 = inlined_call_operand.vmem [shape: f32[1,128], index: 6, kind: input, shape index: {}]   ;;  %s996_s7 = inlined_call_operand.hbm [shape: f32[2,16,128], index: 7, kind: output, shape index: {}]  }
   0x1   :  { %1003 = sst [smem:[#allocation21_spill]] %s990_s1  ;;  %s12_s26 = sshll.u32 %s989_s0, 4  ;;  %s13_s26 = int_to_ptr.vmem [resolvable:$true] %s12_s26 }
   0x2   :  { %s637_s27 = scalar_lea.vmem %s13_s26, 32  ;;  %p642_p1 = scmp.lt.s32.totalorder %s13_s26, %s13_s26 }
   0x3   :  { %p638_p0 = scmp.ne.s32.totalorder %s13_s26, %s637_s27  ;;  %p643_p2 = scmp.lt.s32.totalorder %s637_s27, %s637_s27 }
   0x5   :  { %p644_p3 = por %p643_p2, %p642_p1 }
   0x7   :  { %p645_p4 = pnand %p644_p3, %p638_p0 }
   0x9   :  { %648 = shalt.err (!%p645_p4)  }
   0xa   :  { %s773_s28 = smov [#allocation5]  }
   0xb   :  { %15 = dma.vmem_to_smem %s13_s26, 32, %s773_s28, [#allocation4] }
   0xc   :  { %733 = dma.done.wait [#allocation4], 32 }
   0xd   :  { %734 = vsyncadd [#allocation4], 4294967264 }
   0xe   :  { %17 = sfence }
   0xf   :  { %18 = vsyncpa [#allocation7], 0 }
  0x10   :  { %20 = vsyncpa [#allocation7 + $0x1], 0  ;;  %s822_s29 = smov 0   ;;  %s824_s30 = smov 0  }
  0x11   :  { %s826_s0 = smov 0   ;;  %s828_s8 = smov 0  }
  0x12   :  { %s830_s9 = smov 0   ;;  %s832_s10 = smov 0  }
  0x13 LB: > { %1004 = sst [smem:[#allocation15_spill]] %s743_s29  ;;  %s534_s11 = sadd.s32 4294967295, %s763_s10   ;;  %s763_s10 = sphi %s832_s10, %s26_s10   ;;  %s759_s9 = sphi %s830_s9, %s1020_s9   ;;  %s755_s8 = sphi %s828_s8, %s1019_s8   ;;  %s751_s0 = sphi %s826_s0, %s1018_s0   ;;  %s747_s30 = sphi %s824_s30, %s1022_s30   ;;  %s743_s29 = sphi %s822_s29, %s1021_s29  }
  0x14   : > { %1005 = sst [smem:[#allocation16_spill]] %s751_s0  ;;  %s535_s12 = sadd.s32 4294967294, %s763_s10  }
  0x15   : > { %1006 = sst [smem:[#allocation17_spill]] %s759_s9  ;;  %s38_s13 = sadd.s32 1, %s759_s9 }
  0x16   : > { %s164_s14 = sadd.s32 1, %s751_s0  ;;  %p40_p5 = scmp.ge.s32.totalorder %s38_s13, 2 }
  0x17   : > { %p174_p6 = scmp.ne.s32.totalorder %s751_s0, %s747_s30  ;;  %p175_p7 = scmp.eq.s32.totalorder %s534_s11, 1 }
  0x18   : > { %p180_p8 = scmp.ne.s32.totalorder %s747_s30, %s743_s29  ;;  %s1024_s13 = smov (%p40_p5, %s38_s13), 0 }
  0x19   : > { %1007 = sst [smem:[#allocation18_spill]] %s1024_s13  ;;  %p862_p9 = por %p175_p7, %p174_p6 }
  0x1a   : > { %p181_p10 = scmp.eq.s32.totalorder %s535_s12, 1  ;;  %s159_s16 = ssub.s32 %s759_s9, %s1024_s13 }
  0x1b   : > { %p539_p11 = scmp.ge.s32.totalorder %s763_s10, 1  ;;  %p162_p12 = scmp.eq.s32.totalorder %s159_s16, 0 }
  0x1c   : > { %p869_p13 = por %p181_p10, %p180_p8  ;;  %p230_p0 = scmp.lt.s32.totalorder %s763_s10, 3 }
  0x1d   : > { %s875_s18 = scalar_select %p162_p12, %s751_s0, %s164_s14  }
  0x1e   : > { %s1009_s17 = scalar_select %p869_p13, 1, 0 }
  0x1f   : > { %1011 = sst [smem:[#allocation20_spill]] %s875_s18  ;;  %p231_p1 = pnand %p539_p11, %p230_p0 }
  0x20   : > { %1010 = sst [smem:[#allocation19_spill]] %s1009_s17  ;;  %s997_s19 = sand.u32 (!%p231_p1), 1, %s747_s30  }
  0x21   : > { %234 = sbr.rel (%p231_p1) target bundleno = 412 (0x19c), region = 40  ;;  %p268_p2 = scmp.lt.s32.totalorder (!%p231_p1), %s755_s8, 1 }
  0x22   : > { %s540_s20 = sshll.u32 (!%p231_p1), %s997_s19, 4  ;;  %s1012_s1 = sld [smem:[#allocation21_spill]] (!%p231_p1) }
  0x23   : > { %s887_s26 = scalar_lea.vmem (!%p231_p1), [#allocation6], %s540_s20  ;;  %s889_s27 = smov (!%p231_p1), 0  }
  0x28   : > { %s269_s21 = scalar_select %p268_p2, %s755_s8, 1 }
  0x2a   : > { %s555_s22 = sshll.u32 %s269_s21, 4 }
  0x2b   : > { %s885_s25 = scalar_lea.vmem %s1012_s1, %s555_s22 }
  0x2c LB: >> { %s292_s28 = sshra.s32 %s767_s27, 7  ;;  %s297_s11 = sand.u32 127, %s767_s27  ;;  %s767_s27 = sphi %s889_s27, %s290_s27  }
  0x2d   : >> { %s294_s12 = sadd.s32 %s755_s8, %s292_s28  ;;  %s302_s22 = scalar_lea.vmem [#allocation2], %s767_s27 }
  0x2e   : >> { %s543_s14 = sshll.u32 %s294_s12, 7  ;;  %s310_s20 = sshll.u32 %s302_s22, 4  ;;  %s311_s20 = int_to_ptr.vmem [resolvable:$true] %s310_s20 }
  0x2f   : >> { %s298_s16 = sadd.s32 %s543_s14, %s297_s11  ;;  %s651_s0 = scalar_lea.hbm %s991_s2, 1536 }
  0x30   : >> { %s299_s21 = sld [smem:[#allocation5 + %s298_s16]] }
  0x36   : >> { %s544_s23 = sshll.u32 %s299_s21, 4 }
  0x37   : >> { %s301_s1 = scalar_lea.hbm %s991_s2, %s544_s23 }
  0x38   : >> { %s649_s13 = scalar_lea.hbm %s301_s1, 16  ;;  %p652_p4 = scmp.lt.u32.totalorder %s301_s1, %s991_s2 }
  0x39   : >> { %p650_p3 = scmp.ne.s32.totalorder %s301_s1, %s649_s13  ;;  %p653_p5 = scmp.lt.u32.totalorder %s651_s0, %s649_s13 }
  0x3a   : >> { %p655_p7 = scmp.lt.u32.totalorder %s649_s13, %s301_s1 }
  0x3b   : >> { %p654_p6 = por %p653_p5, %p652_p4 }
  0x3d   : >> { %p656_p8 = por %p655_p7, %p654_p6 }
  0x3f   : >> { %p657_p10 = pnand %p656_p8, %p650_p3 }
  0x41   : >> { %660 = shalt.err (!%p657_p10)  }
  0x42   : >> { %s661_s28 = scalar_lea.vmem %s311_s20, 16  ;;  %s774_s19 = smov [#allocation2]  }
  0x43   : >> { %p662_p11 = scmp.ne.s32.totalorder %s311_s20, %s661_s28  ;;  %s663_s11 = sshll.u32 %s774_s19, 4  ;;  %s664_s11 = int_to_ptr.vmem [resolvable:$false] %s663_s11 }
  0x44   : >> { %s665_s12 = scalar_lea.vmem %s664_s11, 256  ;;  %p666_p12 = scmp.lt.s32.totalorder %s311_s20, %s664_s11 }
  0x45   : >> { %p667_p0 = scmp.lt.s32.totalorder %s665_s12, %s661_s28 }
  0x47   : >> { %p668_p1 = por %p667_p0, %p666_p12 }
  0x49   : >> { %p669_p2 = pnand %p668_p1, %p662_p11 }
  0x4b   : >> { %672 = shalt.err (!%p669_p2)  }
  0x4c   : >> { %313 = dma.hbm_to_vmem [thread:$0]  %s301_s1, 16, %s311_s20, [#allocation3] }
  0x4d   : >> { %s290_s27 = sadd.s32 1, %s767_s27  }
  0x4e   : >> { %p287_p13 = scmp.ge.s32.totalorder %s290_s27, 16  }
  0x4f   : > { %v314_v0 = vld [vmem:[%s885_s25] sm:$0xff] (%p287_p13)  ;;  %v315_v1 = vld [vmem:[%s885_s25 + $0x8] sm:$0xff] (%p287_p13)  ;;  %v775_v2 = vmov (%p287_p13), 0   ;;  %s769_s13 = smov (%p287_p13), 0  }
  0x50   : > { %289 = sbr.rel (!%p287_p13) target bundleno = 44 (0x2c), region = 98  ;;  %632 = vset.pattern.permute.xlu0 (%p287_p13), %v775_v2  ;;  %vm318_vm0 = vcmp.eq.s32.totalorder (%p287_p13), %v314_v0, 0  ;;  %vm319_vm1 = vcmp.eq.s32.totalorder (%p287_p13), %v315_v1, 0  ;;  %v545_v5 = vld [vmem:[%s993_s4] ss:$0 sm:$0xff] (%p287_p13) }
  0x51   : > { %v320_v3 = vsel (%p287_p13), %vm318_vm0, 1, %v775_v2  ;;  %v321_v4 = vsel (%p287_p13), %vm319_vm1, 1, %v775_v2  ;;  %v546_v6 = vld [vmem:[%s993_s4 + $0x1] ss:$0 sm:$0xff] (%p287_p13) }
  0x52   : > { %323 = vperm.xlu0 (%p287_p13), %632, %v320_v3  }
  0x56   : > { %326 = vperm.xlu0 (%p287_p13), %632, %v321_v4  }
  0xd1   : > { %v324_v7 = vpop.permute.xlu0 %323 }
  0xd2   : > { %vm328_vm2 = vcmp.eq.s32.totalorder %v324_v7, 1 }
  0xd3   : > { %v338_v8 = vsel %vm328_vm2, %v545_v5, %v546_v6 }
  0xd5   : > { %v327_v9 = vpop.permute.xlu0 %326 }
  0xd6   : > { %vm329_vm3 = vcmp.eq.s32.totalorder %v327_v9, 1 }
  0xd7   : > { %v339_v10 = vsel %vm329_vm3, %v545_v5, %v546_v6 }
  0xd8 LB: >> { %735 = dma.done.wait [#allocation3], 16  ;;  %s771_s13 = sphi %s769_s13, %s345_s13  }
  0xd9   : >> { %736 = vsyncadd [#allocation3], 4294967280  ;;  %s345_s13 = sadd.s32 1, %s771_s13  }
  0xda   : >> { %p342_p13 = scmp.ge.s32.totalorder %s345_s13, 16  }
  0xdb   : > { %v349_v11 = vld [vmem:[#allocation2] sm:$0xff] (%p342_p13)  ;;  %v350_v13 = vld [vmem:[#allocation2 + $0x8] sm:$0xff] (%p342_p13)  ;;  %s556_s20 = sshll.u32 (%p342_p13), %s755_s8, 8  ;;  %s421_s23 = sshll.u32 (%p342_p13), %s887_s26, 4  ;;  %s938_s23 = int_to_ptr.vmem [resolvable:$true] %s421_s23 }
  0xdc   : > { %344 = sbr.rel (!%p342_p13) target bundleno = 216 (0xd8), region = 109  ;;  %v353_v12 = vld [vmem:[%s992_s3] sm:$0xff] (%p342_p13)  ;;  %v351_v14 = vadd.f32 (%p342_p13), %v349_v11, %v338_v8  ;;  %v352_v15 = vadd.f32 (%p342_p13), %v350_v13, %v339_v10  ;;  %v354_v16 = vld [vmem:[%s992_s3 + $0x8] sm:$0xff] (%p342_p13)  ;;  %s936_s19 = scalar_lea.hbm (%p342_p13), %s996_s7, %s556_s20 }
  0xdd   : > { %v547_v37 = vld [vmem:[%s994_s5] ss:$0 sm:$0xff] (%p342_p13)  ;;  %s1013_s11 = sand.u32 (%p342_p13), 1, %s747_s30   ;;  %s673_s29 = scalar_lea.vmem (%p342_p13), %s938_s23, 256 }
  0xde   : > { %v355_v17 = vadd.f32 (%p342_p13), %v353_v12, %v351_v14  ;;  %v356_v18 = vadd.f32 (%p342_p13), %v354_v16, %v352_v15  ;;  %v548_v41 = vld [vmem:[%s995_s6] ss:$0 sm:$0xff] (%p342_p13)  ;;  %s943_s12 = scalar_lea.sflag (%p342_p13), [#allocation7], %s1013_s11  ;;  %p674_p3 = scmp.ne.s32.totalorder (%p342_p13), %s938_s23, %s673_s29 }
  0xdf   : > { %s776_s8 = smov (%p342_p13), [#allocation6]  }
  0xe0   : > { %357 = vadd.xlane.f32.xlu0 (%p342_p13), %v355_v17  ;;  %v363_v19 = vmul.f32 (%p342_p13), %v355_v17, %v355_v17  ;;  %v364_v20 = vmul.f32 (%p342_p13), %v356_v18, %v356_v18  ;;  %p675_p4 = pnand (%p342_p13), %p674_p3, %p862_p9  ;;  %s677_s1 = sshll.u32 (%p342_p13), %s776_s8, 4  ;;  %s678_s1 = int_to_ptr.vmem [resolvable:$false] %s677_s1 }
  0xe1   : > { %s679_s0 = scalar_lea.vmem (%p342_p13), %s678_s1, 512  ;;  %p680_p6 = scmp.lt.s32.totalorder (%p342_p13), %s938_s23, %s678_s1 }
  0xe2   : > { %365 = vadd.xlane.f32.xlu1 (%p342_p13), %v363_v19  ;;  %p676_p5 = pneg (%p342_p13), %p675_p4  ;;  %p681_p7 = scmp.lt.s32.totalorder (%p342_p13), %s679_s0, %s673_s29 }
  0xe4   : > { %359 = vadd.xlane.f32.xlu0 %v356_v18  ;;  %p682_p8 = por %p681_p7, %p680_p6 }
  0xe6   : > { %367 = vadd.xlane.f32.xlu1 %v364_v20  ;;  %p683_p10 = pnand %p682_p8, %p676_p5 }
 0x16d   : > { %v358_v21 = vpop.xlane.xlu0 %357 }
 0x16e   : > { %v361_v22 = vmul.f32 0.0078125, %v358_v21 }
 0x16f   : > { %v366_v23 = vpop.xlane.xlu1 %365 }
 0x170   : > { %v371_v24 = vmul.f32 %v361_v22, %v361_v22  ;;  %v369_v25 = vmul.f32 0.0078125, %v366_v23  ;;  %v381_v39 = vsub.f32 %v355_v17, %v361_v22 }
 0x171   : > { %v360_v26 = vpop.xlane.xlu0 %359 }
 0x172   : > { %v373_v27 = vsub.f32 %v369_v25, %v371_v24  ;;  %v362_v28 = vmul.f32 0.0078125, %v360_v26 }
 0x173   : > { %v368_v29 = vpop.xlane.xlu1 %367 }
 0x174   : > { %v375_v30 = vmax.f32 %v373_v27, 0.0  ;;  %v372_v31 = vmul.f32 %v362_v28, %v362_v28  ;;  %v370_v32 = vmul.f32 0.0078125, %v368_v29  ;;  %v382_v44 = vsub.f32 %v356_v18, %v362_v28 }
 0x176   : > { %v377_v33 = vadd.f32 1e-05, %v375_v30  ;;  %v374_v34 = vsub.f32 %v370_v32, %v372_v31 }
 0x178   : > { %633 = vrsqrt.f32 %v377_v33  ;;  %v376_v35 = vmax.f32 %v374_v34, 0.0 }
 0x17a   : > { %v378_v36 = vadd.f32 1e-05, %v376_v35 }
 0x17c   : > { %635 = vrsqrt.f32 %v378_v36 }
 0x182   : > { %v634_v38 = vpop.eup %633 }
 0x183   : > { %v390_v40 = vmul.f32 %v634_v38, %v547_v37 }
 0x185   : > { %v392_v42 = vmul.f32 %v390_v40, %v381_v39 }
 0x186   : > { %v636_v43 = vpop.eup %635 }
 0x187   : > { %v391_v45 = vmul.f32 %v636_v43, %v547_v37  ;;  %v401_v46 = vadd.f32 %v548_v41, %v392_v42 }
 0x189   : > { %v393_v47 = vmul.f32 %v391_v45, %v382_v44  ;;  %403 = vst [vmem:[%s887_s26] sm:$0xff] %v401_v46 }
 0x18b   : > { %v402_v48 = vadd.f32 %v548_v41, %v393_v47 }
 0x18d   : > { %404 = vst [vmem:[%s887_s26 + $0x8] sm:$0xff] %v402_v48 }
 0x18e   : > { %686 = shalt.err (!%p683_p10)
}
 0x18f   : > { %s687_s26 = scalar_lea.hbm %s936_s19, 256  ;;  %s691_s17 = scalar_lea.hbm %s996_s7, 512 }
 0x190   : > { %p688_p11 = scmp.ne.s32.totalorder %s936_s19, %s687_s26  ;;  %p692_p1 = scmp.lt.u32.totalorder %s936_s19, %s996_s7 }
 0x191   : > { %p693_p2 = scmp.lt.u32.totalorder %s691_s17, %s687_s26  ;;  %p695_p3 = scmp.lt.u32.totalorder %s687_s26, %s936_s19 }
 0x192   : > { %p689_p12 = pnand %p688_p11, %p862_p9 }
 0x193   : > { %p694_p13 = por %p693_p2, %p692_p1 }
 0x194   : > { %p690_p0 = pneg %p689_p12 }
 0x195   : > { %p696_p4 = por %p695_p3, %p694_p13 }
 0x197   : > { %p697_p5 = pnand %p696_p4, %p690_p0 }
 0x199   : > { %700 = shalt.err (!%p697_p5)
}
 0x19a   : > { %s777_s27 = smov 128   ;;  %s778_s14 = smov 8  }
 0x19b   : > { %557 = dma.vmem_to_hbm [thread:$0]  (%p862_p9), %s938_s23, 256, %s936_s19, %s943_s12, %s777_s27, %s777_s27, %s778_s14  }
 0x19c PF: > { %s1014_s16 = sld [smem:[#allocation15_spill]]  ;;  %s1015_s21 = sld [smem:[#allocation19_spill]] }
 0x19d   : > { %p563_p6 = scmp.ge.s32.totalorder %s763_s10, 2 }
 0x1a2   : > { %s436_s22 = sand.u32 1, %s1014_s16   ;;  %p1016_p7 = scmp.ne.s32.totalorder %s1015_s21, 0 }
 0x1a3   : > { %s437_s20 = scalar_lea.sflag [#allocation7], %s436_s22 }
 0x1a4   : > { %p560_p8 = pnand %p563_p6, %p1016_p7 }
 0x1a6   : > { %738 = dma.done.wait (!%p560_p8), %s437_s20, 256  }
 0x1a7   : > { %740 = vsyncadd (!%p560_p8), %s437_s20, 4294967040  ;;  %s26_s10 = sadd.s32 1, %s763_s10   ;;  %s1017_s24 = sld [smem:[#allocation16_spill]] }
 0x1a8   : > { %p23_p10 = scmp.ge.s32.totalorder %s26_s10, 4   ;;  %s1018_s0 = sld [smem:[#allocation20_spill]] }
 0x1a9   : > { %s1019_s8 = sld [smem:[#allocation17_spill]]  ;;  %s1020_s9 = sld [smem:[#allocation18_spill]] }
 0x1aa   : > { %s1021_s29 = smov %s747_s30  ;;  %25 = sbr.rel (!%p23_p10) target bundleno = 19 (0x13), region = 120 }
 0x1ad   : > { %s1022_s30 = smov %s1017_s24 }
 0x1b1   :  { %442 = vsyncpa [#allocation7], 1 }
 0x1b2   :  { %444 = vsyncpa [#allocation7 + $0x1], 1 }
 0x1b3   :  { %445 = vsyncmov [#allocation3] }
 0x1b6   :  { %s446_s15 = vpop.sfrf %445 }
 0x1b7   :  { %p554_p9 = scmp.ne.s32.totalorder %s446_s15, 0 }
 0x1b9   :  { %450 = shalt.err (%p554_p9)  }

</bundles_post_ra>
